<compile_context>
chip_gen: v7x
topology: tpu7x:2x2x1
jax: 0.10.0
libtpu: 0.0.40
codegen_flags: <defaults>
</compile_context>

<pallas_src>
import functools

import jax
import jax.numpy as jnp
from jax.experimental import pallas as pl
from jax.experimental.pallas import tpu as pltpu

ALPHA = 0.25
GAMMA = 2.0            # integer-valued -> explicit multiply in the kernel
IGNORE_INDEX = 2
LANE = 128
SUBLANE = 8
NUM_CHUNKS = 2                    # leading "parallel" grid axis (v7x: 2 TensorCores per chip)
TARGET_BLOCK_ELEMS = 8192 * 128   # ~4 MiB of f32 logits per grid block
TARGET_SLICE_ELEMS = 512 * 128    # ~256 KiB of f32 temporaries per in-kernel row slice


def _round_down(x, m):
    return (x // m) * m


def _loss_terms(logits_f32, labels):
    """Elementwise focal-loss terms; shared by the kernel slice body and the tiny-input path."""
    is_pos = labels == 1
    valid = labels != IGNORE_INDEX
    prob = jax.nn.sigmoid(logits_f32)
    pt = jnp.where(is_pos, prob, 1.0 - prob)
    one_minus_pt = 1.0 - pt
    focal_term = one_minus_pt * one_minus_pt           # (1 - pt) ** 2, no pow/exp
    alpha_factor = jnp.where(is_pos, ALPHA, 1.0 - ALPHA)
    loss = -alpha_factor * focal_term * jnp.log(pt + 1e-07)
    return loss, valid


def _focal_kernel(pr_ref, gt_ref, loss_ref, cnt_ref, *,
                  total_rows, num_blocks, block_rows, slice_rows):
    c = pl.program_id(0)
    i = pl.program_id(1)

    # Per-chunk accumulator init on the chunk's first inner step (kept unconditional so even a
    # fully clamped chunk contributes clean zeros).
    @pl.when(i == 0)
    def _():
        loss_ref[...] = jnp.zeros_like(loss_ref)
        cnt_ref[...] = jnp.zeros_like(cnt_ref)

    blk = c * pl.num_programs(1) + i

    # Clamped (out-of-range) chunk-tail steps skip the redundant re-compute of the last block.
    @pl.when(blk < num_blocks)
    def _():
        w = pr_ref.shape[1]
        base_row = blk * block_rows          # NOTE: int32 row index; fine for < 2^31 rows.
        n_slices = block_rows // slice_rows  # static

        def slice_body(s, carry):
            r0 = pl.multiple_of(s * slice_rows, slice_rows)
            logits = pr_ref[pl.ds(r0, slice_rows), :].astype(jnp.float32)  # upcast in-kernel
            labels = gt_ref[pl.ds(r0, slice_rows), :]

            # Rows past the logical end of the (N*H, W) view (partial edge blocks) hold garbage
            # VMEM; mask them out. Select (not multiply) so NaN/Inf from garbage is discarded.
            row_ids = jax.lax.broadcasted_iota(jnp.int32, (slice_rows, w), 0)
            in_bounds = (base_row + r0 + row_ids) < total_rows

            loss, label_valid = _loss_terms(logits, labels)
            valid = label_valid & in_bounds
            loss = jnp.where(valid, loss, 0.0)

            # Fold the slice's rows onto the (8, W) accumulators with VPU adds only.
            loss_fold = loss.reshape(slice_rows // SUBLANE, SUBLANE, w).sum(axis=0)
            cnt_fold = valid.astype(jnp.int32).reshape(
                slice_rows // SUBLANE, SUBLANE, w).sum(axis=0)
            loss_ref[...] += loss_fold
            cnt_ref[...] += cnt_fold
            return carry

        if n_slices == 1:
            slice_body(0, 0)
        else:
            jax.lax.fori_loop(0, n_slices, slice_body, 0)


@jax.jit
def masked_focal_loss(y_pr, y_gt):
    """y_pr: (N,1,H,W) logits (f32 or bf16); y_gt: (N,H,W) integer labels. Returns scalar f32."""
    y_pr = jnp.squeeze(y_pr, axis=1)                    # (N, H, W)
    n, h, w = y_pr.shape
    r = n * h
    # Leading-dim collapse of a row-major array is a bitcast: no pad, no slice, no astype pass.
    pr2 = y_pr.reshape(r, w)
    gt2 = y_gt.reshape(r, w)

    if r < SUBLANE:
        # Fewer than 8 rows: not enough for a sublane tile and trivially small -> pure JAX.
        loss, valid = _loss_terms(pr2.astype(jnp.float32), gt2)
        loss = jnp.where(valid, loss, 0.0)
        cnt = jnp.sum(valid.astype(jnp.float32))
        return jnp.where(cnt > 0, jnp.sum(loss) / cnt, jnp.float32(0.0))

    gran = 32 if r >= 32 else SUBLANE           # i8 packs 32 rows / sublane tile, bf16 packs 16
    w_pad = pl.cdiv(w, LANE) * LANE             # VMEM lane footprint of one row

    slice_rows = min(_round_down(r, gran),
                     max(gran, _round_down(TARGET_SLICE_ELEMS // w_pad, gran)))
    max_block_rows = max(slice_rows,
                         _round_down(TARGET_BLOCK_ELEMS // w_pad, slice_rows))
    block_rows = min(max_block_rows, _round_down(r, slice_rows))   # multiple of slice_rows
    num_blocks = pl.cdiv(r, block_rows)

    nchunks = NUM_CHUNKS if num_blocks >= NUM_CHUNKS else 1
    inner = pl.cdiv(num_blocks, nchunks)

    def in_map(c, i):
        # Clamp so chunk-tail steps never DMA an out-of-range block; the kernel also skips
        # their compute via pl.when(blk < num_blocks).
        return (jnp.minimum(c * inner + i, num_blocks - 1), 0)

    def out_map(c, i):
        return (c, 0)

    out_bytes = nchunks * SUBLANE * w * (4 + 4)
    cost = pl.CostEstimate(
        flops=12 * r * w,
        transcendentals=2 * r * w,
        bytes_accessed=int(pr2.size * pr2.dtype.itemsize
                           + gt2.size * gt2.dtype.itemsize + out_bytes))

    loss_acc, cnt_acc = pl.pallas_call(
        functools.partial(_focal_kernel, total_rows=r, num_blocks=num_blocks,
                          block_rows=block_rows, slice_rows=slice_rows),
        out_shape=(
            jax.ShapeDtypeStruct((nchunks * SUBLANE, w), jnp.float32),
            jax.ShapeDtypeStruct((nchunks * SUBLANE, w), jnp.int32),
        ),
        grid_spec=pltpu.PrefetchScalarGridSpec(
            num_scalar_prefetch=0,
            grid=(nchunks, inner),
            in_specs=[
                pl.BlockSpec((block_rows, w), in_map),
                pl.BlockSpec((block_rows, w), in_map),
            ],
            out_specs=[
                pl.BlockSpec((SUBLANE, w), out_map),
                pl.BlockSpec((SUBLANE, w), out_map),
            ],
        ),
        compiler_params=pltpu.CompilerParams(
            dimension_semantics=("parallel", "arbitrary"),
            vmem_limit_bytes=48 * 1024 * 1024),
        cost_estimate=cost,
    )(pr2, gt2)

    total_loss = jnp.sum(loss_acc)
    count = jnp.sum(cnt_acc.astype(jnp.float32))
    return jnp.where(count > 0, total_loss / count, jnp.float32(0.0))


def _reference(y_pr, y_gt):
    """Pure-JAX reference mirroring the PyTorch forward (math in f32)."""
    y_pr = jnp.squeeze(y_pr, axis=1).astype(jnp.float32)
    valid = y_gt != IGNORE_INDEX
    y_gt_f = y_gt.astype(jnp.float32)
    prob = jax.nn.sigmoid(y_pr)
    pt = jnp.where(y_gt_f == 1.0, prob, 1.0 - prob)
    focal = (1.0 - pt) ** GAMMA
    alpha_f = jnp.where(y_gt_f == 1.0, ALPHA, 1.0 - ALPHA)
    loss = -alpha_f * focal * jnp.log(pt + 1e-07)
    loss = jnp.where(valid, loss, 0.0)
    cnt = jnp.sum(valid.astype(jnp.float32))
    return jnp.where(cnt > 0, jnp.sum(loss) / cnt, 0.0)


if __name__ == "__main__":
    key = jax.random.PRNGKey(0)
    k1, k2, k3, k4 = jax.random.split(key, 4)

    # Small case consistent with the module: (2,1,16,16) f32 logits, (2,16,16) int32 labels
    # (labels passed straight through — no wrapper-side cast).
    N, H, W = 2, 16, 16
    y_pr = jax.random.normal(k1, (N, 1, H, W), dtype=jnp.float32)
    y_gt = jax.random.randint(k2, (N, H, W), 0, 3, dtype=jnp.int32)

    out = jax.block_until_ready(masked_focal_loss(y_pr, y_gt))
    ref = jax.block_until_ready(_reference(y_pr, y_gt))
    assert out.shape == (), f"expected scalar, got {out.shape}"
    assert jnp.allclose(out, ref, rtol=1e-4, atol=1e-6), (out, ref)

    # Ragged case with native bf16 logits + int8 labels: exercises the multi-block grid, the
    # 2-chunk parallel axis, partial edge blocks (1185 rows of width 241), the in-kernel
    # fori_loop over row slices and the no-pad / no-cast wrapper path.
    N2, H2, W2 = 5, 237, 241
    y_pr2 = jax.random.normal(k3, (N2, 1, H2, W2), dtype=jnp.bfloat16)
    y_gt2 = jax.random.randint(k4, (N2, H2, W2), 0, 3, dtype=jnp.int32).astype(jnp.int8)

    out2 = jax.block_until_ready(masked_focal_loss(y_pr2, y_gt2))
    ref2 = jax.block_until_ready(_reference(y_pr2, y_gt2))
    assert jnp.allclose(out2, ref2, rtol=1e-4, atol=1e-6), (out2, ref2)

    print("KERNEL_OK")
</pallas_src>

<mosaic_0001>
module attributes {stable_mosaic.version = 11 : i64} {
  func.func @_focal_kernel(%arg0: i32, %arg1: i32, %arg2: memref<32x16xf32, #tpu.memory_space<vmem>>, %arg3: memref<32x16xi32, #tpu.memory_space<vmem>>, %arg4: memref<8x16xf32, #tpu.memory_space<vmem>>, %arg5: memref<8x16xi32, #tpu.memory_space<vmem>>) attributes {dimension_semantics = [#tpu.dimension_semantics<parallel>, #tpu.dimension_semantics<arbitrary>], iteration_bounds = array<i64: 1, 1>, scalar_prefetch = 0 : i64, scratch_operands = 0 : i64, tpu.core_type = #tpu.core_type<tc>, window_params = [{transform_indices = @transform_0, window_bounds = array<i64: 32, 16>}, {transform_indices = @transform_1, window_bounds = array<i64: 32, 16>}, {transform_indices = @transform_2, window_bounds = array<i64: 8, 16>}, {transform_indices = @transform_3, window_bounds = array<i64: 8, 16>}]} {
    %c0_i32 = arith.constant 0 : i32
    %0 = arith.cmpi eq, %arg1, %c0_i32 : i32
    %1 = arith.extui %0 : i1 to i32
    %c0_i32_0 = arith.constant 0 : i32
    %2 = arith.cmpi ne, %1, %c0_i32_0 : i32
    scf.if %2 {
      %cst = arith.constant 0.000000e+00 : f32
      %8 = vector.broadcast %cst : f32 to vector<8x16xf32>
      %c0 = arith.constant 0 : index
      %c0_3 = arith.constant 0 : index
      %9 = vector.load %arg4[%c0, %c0_3] : memref<8x16xf32, #tpu.memory_space<vmem>>, vector<8x16xf32>
      tpu.vector_store %arg4[%c0, %c0_3], %8 {strides = array<i32>} : memref<8x16xf32, #tpu.memory_space<vmem>>, vector<8x16xf32>,
      %c0_i32_4 = arith.constant 0 : i32
      %10 = vector.broadcast %c0_i32_4 : i32 to vector<8x16xi32>
      %c0_5 = arith.constant 0 : index
      %c0_6 = arith.constant 0 : index
      %11 = vector.load %arg5[%c0_5, %c0_6] : memref<8x16xi32, #tpu.memory_space<vmem>>, vector<8x16xi32>
      tpu.vector_store %arg5[%c0_5, %c0_6], %10 {strides = array<i32>} : memref<8x16xi32, #tpu.memory_space<vmem>>, vector<8x16xi32>,
    } else {
    }
    %c1_i32 = arith.constant 1 : i32
    %3 = arith.muli %arg0, %c1_i32 : i32
    %4 = arith.addi %3, %arg1 : i32
    %c1_i32_1 = arith.constant 1 : i32
    %5 = arith.cmpi slt, %4, %c1_i32_1 : i32
    %6 = arith.extui %5 : i1 to i32
    %c0_i32_2 = arith.constant 0 : i32
    %7 = arith.cmpi ne, %6, %c0_i32_2 : i32
    scf.if %7 {
      %c32_i32 = arith.constant 32 : i32
      %8 = arith.muli %4, %c32_i32 : i32
      %c0_i32_3 = arith.constant 0 : i32
      %9 = tpu.assume_multiple %c0_i32_3, 32 : i32
      %10 = arith.index_cast %9 : i32 to index
      %c0 = arith.constant 0 : index
      %11 = vector.load %arg2[%10, %c0] : memref<32x16xf32, #tpu.memory_space<vmem>>, vector<32x16xf32>
      %12 = arith.index_cast %9 : i32 to index
      %c0_4 = arith.constant 0 : index
      %13 = vector.load %arg3[%12, %c0_4] : memref<32x16xi32, #tpu.memory_space<vmem>>, vector<32x16xi32>
      %14 = tpu.iota {dimensions = array<i32: 0>} : vector<32x16xi32>
      %15 = arith.addi %8, %9 : i32
      %16 = vector.broadcast %15 : i32 to vector<32x16xi32>
      %17 = arith.addi %16, %14 : vector<32x16xi32>
      %c32_i32_5 = arith.constant 32 : i32
      %18 = vector.broadcast %c32_i32_5 : i32 to vector<32x16xi32>
      %19 = arith.cmpi slt, %17, %18 : vector<32x16xi32>
      %c1_i32_6 = arith.constant 1 : i32
      %20 = vector.broadcast %c1_i32_6 : i32 to vector<32x16xi32>
      %21 = arith.cmpi eq, %13, %20 : vector<32x16xi32>
      %c2_i32 = arith.constant 2 : i32
      %22 = vector.broadcast %c2_i32 : i32 to vector<32x16xi32>
      %23 = arith.cmpi ne, %13, %22 : vector<32x16xi32>
      %24 = arith.negf %11 : vector<32x16xf32>
      %25 = math.exp %24 : vector<32x16xf32>
      %cst = arith.constant 1.000000e+00 : f32
      %26 = vector.broadcast %cst : f32 to vector<32x16xf32>
      %27 = arith.addf %26, %25 : vector<32x16xf32>
      %28 = arith.divf %26, %27 : vector<32x16xf32>
      %cst_7 = arith.constant 1.000000e+00 : f32
      %29 = vector.broadcast %cst_7 : f32 to vector<32x16xf32>
      %30 = arith.subf %29, %28 : vector<32x16xf32>
      %31 = arith.select %21, %28, %30 : vector<32x16xi1>, vector<32x16xf32>
      %cst_8 = arith.constant 1.000000e+00 : f32
      %32 = vector.broadcast %cst_8 : f32 to vector<32x16xf32>
      %33 = arith.subf %32, %31 : vector<32x16xf32>
      %34 = arith.mulf %33, %33 : vector<32x16xf32>
      %cst_9 = arith.constant 2.500000e-01 : f32
      %cst_10 = arith.constant 7.500000e-01 : f32
      %35 = vector.broadcast %cst_9 : f32 to vector<32x16xf32>
      %36 = vector.broadcast %cst_10 : f32 to vector<32x16xf32>
      %37 = arith.select %21, %35, %36 : vector<32x16xi1>, vector<32x16xf32>
      %cst_11 = arith.constant 0.000000e+00 : f32
      %38 = vector.broadcast %cst_11 : f32 to vector<32x16xf32>
      %39 = arith.subf %38, %37 : vector<32x16xf32>
      %40 = arith.mulf %39, %34 : vector<32x16xf32>
      %cst_12 = arith.constant 1.000000e-07 : f32
      %41 = vector.broadcast %cst_12 : f32 to vector<32x16xf32>
      %42 = arith.addf %31, %41 : vector<32x16xf32>
      %43 = math.log %42 : vector<32x16xf32>
      %44 = arith.mulf %40, %43 : vector<32x16xf32>
      %45 = arith.andi %23, %19 : vector<32x16xi1>
      %cst_13 = arith.constant 0.000000e+00 : f32
      %46 = vector.broadcast %cst_13 : f32 to vector<32x16xf32>
      %47 = arith.select %45, %44, %46 : vector<32x16xi1>, vector<32x16xf32>
      %48 = vector.shape_cast %47 : vector<32x16xf32> to vector<4x8x16xf32>
      %cst_14 = arith.constant dense<0.000000e+00> : vector<8x16xf32>
      %49 = vector.multi_reduction <add>, %48, %cst_14 [0] : vector<4x8x16xf32> to vector<8x16xf32>
      %50 = arith.extui %45 : vector<32x16xi1> to vector<32x16xi32>
      %51 = vector.shape_cast %50 : vector<32x16xi32> to vector<4x8x16xi32>
      %cst_15 = arith.constant dense<0> : vector<8x16xi32>
      %52 = vector.multi_reduction <add>, %51, %cst_15 [0] : vector<4x8x16xi32> to vector<8x16xi32>
      %c0_16 = arith.constant 0 : index
      %c0_17 = arith.constant 0 : index
      %53 = vector.load %arg4[%c0_16, %c0_17] : memref<8x16xf32, #tpu.memory_space<vmem>>, vector<8x16xf32>
      %54 = arith.addf %53, %49 : vector<8x16xf32>
      %c0_18 = arith.constant 0 : index
      %c0_19 = arith.constant 0 : index
      %55 = vector.load %arg4[%c0_18, %c0_19] : memref<8x16xf32, #tpu.memory_space<vmem>>, vector<8x16xf32>
      tpu.vector_store %arg4[%c0_18, %c0_19], %54 {strides = array<i32>} : memref<8x16xf32, #tpu.memory_space<vmem>>, vector<8x16xf32>,
      %c0_20 = arith.constant 0 : index
      %c0_21 = arith.constant 0 : index
      %56 = vector.load %arg5[%c0_20, %c0_21] : memref<8x16xi32, #tpu.memory_space<vmem>>, vector<8x16xi32>
      %57 = arith.addi %56, %52 : vector<8x16xi32>
      %c0_22 = arith.constant 0 : index
      %c0_23 = arith.constant 0 : index
      %58 = vector.load %arg5[%c0_22, %c0_23] : memref<8x16xi32, #tpu.memory_space<vmem>>, vector<8x16xi32>
      tpu.vector_store %arg5[%c0_22, %c0_23], %57 {strides = array<i32>} : memref<8x16xi32, #tpu.memory_space<vmem>>, vector<8x16xi32>,
    } else {
    }
    return
  }
  func.func @transform_0(%arg0: i32, %arg1: i32) -> (i32, i32) {
    %c1_i32 = arith.constant 1 : i32
    %0 = arith.muli %arg0, %c1_i32 : i32
    %1 = arith.addi %0, %arg1 : i32
    %c0_i32 = arith.constant 0 : i32
    %2 = arith.minsi %1, %c0_i32 : i32
    %c0_i32_0 = arith.constant 0 : i32
    %c0_i32_1 = arith.constant 0 : i32
    return %2, %c0_i32_0 : i32, i32
  }
  func.func @transform_1(%arg0: i32, %arg1: i32) -> (i32, i32) {
    %c1_i32 = arith.constant 1 : i32
    %0 = arith.muli %arg0, %c1_i32 : i32
    %1 = arith.addi %0, %arg1 : i32
    %c0_i32 = arith.constant 0 : i32
    %2 = arith.minsi %1, %c0_i32 : i32
    %c0_i32_0 = arith.constant 0 : i32
    %c0_i32_1 = arith.constant 0 : i32
    return %2, %c0_i32_0 : i32, i32
  }
  func.func @transform_2(%arg0: i32, %arg1: i32) -> (i32, i32) {
    %c0_i32 = arith.constant 0 : i32
    %c0_i32_0 = arith.constant 0 : i32
    return %arg0, %c0_i32 : i32, i32
  }
  func.func @transform_3(%arg0: i32, %arg1: i32) -> (i32, i32) {
    %c0_i32 = arith.constant 0 : i32
    %c0_i32_0 = arith.constant 0 : i32
    return %arg0, %c0_i32 : i32, i32
  }
}

</mosaic_0001>

<bundles_post_ra>
// kernel: masked_focal_loss.1
= control target key start
LH: loop header
LB: loop body
LE: loop exit
PB: predicated region body
PF: predicated region fallthrough
CT: control target
= control target key end

     0   :  { %9 = vsyncpa [#allocation3], 0  ;;  %s432_s0 = inlined_call_operand.hbm [shape: f32[32,16], index: 0, kind: input, shape index: {}]   ;;  %s433_s1 = inlined_call_operand.hbm [shape: s32[32,16], index: 1, kind: input, shape index: {}]   ;;  %s434_s2 = inlined_call_operand.vmem [shape: f32[8,16], index: 2, kind: output, shape index: {0}]   ;;  %s435_s3 = inlined_call_operand.vmem [shape: s32[8,16], index: 3, kind: output, shape index: {1}]  }
   0x1   :  { %10 = vsyncpa [#allocation5], 0  ;;  %s303_s12 = smov [#allocation2]   ;;  %s255_s16 = scalar_lea.hbm %s432_s0, 512 }
   0x2   :  { %s22_s13 = sshll.u32 %s303_s12, 4  ;;  %p256_p0 = scmp.ne.s32.totalorder %s432_s0, %s255_s16  ;;  %s23_s13 = int_to_ptr.vmem [resolvable:$true] %s22_s13 }
   0x3   :  { %p259_p1 = scmp.lt.u32.totalorder %s255_s16, %s432_s0 }
   0x5   :  { %p261_p2 = pnand %p259_p1, %p256_p0 }
   0x7   :  { %264 = shalt.err (!%p261_p2)
}
   0x8   :  { %s265_s21 = scalar_lea.vmem %s23_s13, 512  ;;  %p270_p4 = scmp.lt.s32.totalorder %s23_s13, %s23_s13 }
   0x9   :  { %p266_p3 = scmp.ne.s32.totalorder %s23_s13, %s265_s21  ;;  %p271_p5 = scmp.lt.s32.totalorder %s265_s21, %s265_s21 }
   0xb   :  { %p272_p6 = por %p271_p5, %p270_p4 }
   0xd   :  { %p273_p7 = pnand %p272_p6, %p266_p3 }
   0xf   :  { %276 = shalt.err (!%p273_p7)
}
  0x10   :  { %s304_s22 = smov 128   ;;  %s305_s23 = smov 8  }
  0x11   :  { %28 = dma.hbm_to_vmem [thread:$0]  %s432_s0, 512, %s23_s13, [#allocation3], %s304_s22, %s304_s22, %s305_s23  }
  0x12   :  { %s306_s26 = smov [#allocation4]   ;;  %s277_s30 = scalar_lea.hbm %s433_s1, 512 }
  0x13   :  { %s40_s27 = sshll.u32 %s306_s26, 4  ;;  %p278_p8 = scmp.ne.s32.totalorder %s433_s1, %s277_s30  ;;  %s41_s27 = int_to_ptr.vmem [resolvable:$true] %s40_s27 }
  0x14   :  { %p281_p9 = scmp.lt.u32.totalorder %s277_s30, %s433_s1 }
  0x16   :  { %p283_p10 = pnand %p281_p9, %p278_p8 }
  0x18   :  { %286 = shalt.err (!%p283_p10)
}
  0x19   :  { %s287_s8 = scalar_lea.vmem %s41_s27, 512  ;;  %p292_p12 = scmp.lt.s32.totalorder %s41_s27, %s41_s27 }
  0x1a   :  { %p288_p11 = scmp.ne.s32.totalorder %s41_s27, %s287_s8  ;;  %p293_p13 = scmp.lt.s32.totalorder %s287_s8, %s287_s8 }
  0x1c   :  { %p294_p0 = por %p293_p13, %p292_p12 }
  0x1e   :  { %p295_p1 = pnand %p294_p0, %p288_p11 }
  0x20   :  { %298 = shalt.err (!%p295_p1)
}
  0x21   :  { %46 = dma.hbm_to_vmem [thread:$0]  %s433_s1, 512, %s41_s27, [#allocation5], %s304_s22, %s304_s22, %s305_s23  }
  0x22   :  { %299 = dma.done.wait [#allocation3], 512  }
  0x23   :  { %300 = vsyncadd [#allocation3], 4294966784 }
  0x24   :  { %301 = dma.done.wait [#allocation5], 512  }
  0x25   :  { %302 = vsyncadd [#allocation5], 4294966784  ;;  %vm65_vm0 = vcmask 130048   ;;  %v307_v0 = vmov 0.0   ;;  %v308_v1 = vmov 0   ;;  %v74_v2 = vld [vmem:[#allocation2] sm:$0xff] }
  0x26   :  { %66 = vst.msk [vmem:[%s434_s2] sm:$0xff] %vm65_vm0, %v307_v0  ;;  %67 = vst.msk [vmem:[%s435_s3] sm:$0xff] %vm65_vm0, %v308_v1  ;;  %v75_v3 = vld [vmem:[#allocation2 + $0x8] sm:$0xff]  ;;  %v76_v4 = vld [vmem:[#allocation2 + $0x10] sm:$0xff]  ;;  %v220_v5 = vmul.f32 -1.442695, %v74_v2 }
  0x27   :  { %v362_v6 = vld [vmem:[#allocation4 + $0x10] sm:$0xff]  ;;  %v221_v7 = vmul.f32 -1.442695, %v75_v3  ;;  %v365_v8 = vld [vmem:[#allocation4] sm:$0xff]  ;;  %v367_v9 = vld [vmem:[#allocation4 + $0x8] sm:$0xff]  ;;  %v309_v51 = vmov 0.75  }
  0x28   :  { %vm103_vm1 = vcmp.ne.s32.totalorder %v362_v6, 2  ;;  %231 = vpow2.f32 %v220_v5  ;;  %v222_v10 = vmul.f32 -1.442695, %v76_v4  ;;  %v77_v11 = vld [vmem:[#allocation2 + $0x18] sm:$0xff]  ;;  %vm101_vm2 = vcmp.ne.s32.totalorder %v365_v8, 2 }
  0x29   :  { %vm102_vm3 = vcmp.ne.s32.totalorder %v367_v9, 2  ;;  %233 = vpow2.f32 %v221_v7  ;;  %v189_v12 = vsel %vm101_vm2, 1, %v308_v1  ;;  %v191_v14 = vsel %vm103_vm1, 1, %v308_v1  ;;  %v377_v15 = vld [vmem:[#allocation4 + $0x18] sm:$0xff] }
  0x2a   :  { %235 = vpow2.f32 %v222_v10  ;;  %v190_v13 = vsel %vm102_vm3, 1, %v308_v1  ;;  %vm104_vm4 = vcmp.ne.s32.totalorder %v377_v15, 2  ;;  %v223_v16 = vmul.f32 -1.442695, %v77_v11 }
  0x2b   :  { %v193_v17 = vsel %vm65_vm0, %v189_v12, 0  ;;  %v192_v18 = vsel %vm104_vm4, 1, %v308_v1  ;;  %v194_v19 = vsel %vm65_vm0, %v190_v13, 0  ;;  %v195_v20 = vsel %vm65_vm0, %v191_v14, 0 }
  0x2c   :  { %237 = vpow2.f32 %v223_v16  ;;  %v196_v21 = vsel %vm65_vm0, %v192_v18, 0  ;;  %v197_v22 = vadd.s32 %v194_v19, %v193_v17  ;;  %vm97_vm5 = vcmp.eq.s32.totalorder %v365_v8, 1 }
  0x2d   :  { %v198_v23 = vadd.s32 %v196_v21, %v195_v20  ;;  %v203_v24 = vld [vmem:[%s435_s3] sm:$0xff]  ;;  %vm98_vm6 = vcmp.eq.s32.totalorder %v367_v9, 1  ;;  %vm99_vm7 = vcmp.eq.s32.totalorder %v362_v6, 1  ;;  %vm100_vm8 = vcmp.eq.s32.totalorder %v377_v15, 1 }
  0x2e   :  { %v145_v52 = vsel %vm97_vm5, 0.25, %v309_v51  ;;  %v146_v55 = vsel %vm98_vm6, 0.25, %v309_v51  ;;  %v147_v57 = vsel %vm99_vm7, 0.25, %v309_v51  ;;  %v148_v1 = vsel %vm100_vm8, 0.25, %v309_v51  ;;  %v200_v9 = vld [vmem:[%s434_s2] sm:$0xff] }
  0x2f   :  { %v199_v25 = vadd.s32 %v198_v23, %v197_v22  ;;  %v149_v59 = vsub.f32 0.0, %v145_v52  ;;  %v150_v61 = vsub.f32 0.0, %v146_v55  ;;  %v151_v63 = vsub.f32 0.0, %v147_v57 }
  0x30   :  { %v152_v7 = vsub.f32 0.0, %v148_v1 }
  0x31   :  { %v204_v28 = vadd.s32 %v203_v24, %v199_v25 }
  0x32   :  { %v232_v26 = vpop.eup %231 }
  0x33   :  { %v117_v27 = vadd.f32 1.0, %v232_v26  ;;  %v234_v29 = vpop.eup %233  ;;  %205 = vst.msk [vmem:[%s435_s3] sm:$0xff] %vm65_vm0, %v204_v28 }
  0x34   :  { %v236_v30 = vpop.eup %235  ;;  %v118_v31 = vadd.f32 1.0, %v234_v29 }
  0x35   :  { %239 = vrcp.f32 %v117_v27  ;;  %v119_v32 = vadd.f32 1.0, %v236_v30 }
  0x36   :  { %241 = vrcp.f32 %v118_v31  ;;  %v238_v33 = vpop.eup %237 }
  0x37   :  { %243 = vrcp.f32 %v119_v32  ;;  %v120_v34 = vadd.f32 1.0, %v238_v33 }
  0x39   :  { %245 = vrcp.f32 %v120_v34 }
  0x3f   :  { %v240_v35 = vpop.eup %239 }
  0x40   :  { %v129_v36 = vsub.f32 1.0, %v240_v35  ;;  %v242_v37 = vpop.eup %241 }
  0x41   :  { %v244_v38 = vpop.eup %243  ;;  %v130_v39 = vsub.f32 1.0, %v242_v37 }
  0x42   :  { %v133_v40 = vsel %vm97_vm5, %v240_v35, %v129_v36  ;;  %v131_v41 = vsub.f32 1.0, %v244_v38 }
  0x43   :  { %v157_v42 = vadd.f32 1e-07, %v133_v40  ;;  %v134_v43 = vsel %vm98_vm6, %v242_v37, %v130_v39  ;;  %v246_v44 = vpop.eup %245  ;;  %v137_v49 = vsub.f32 1.0, %v133_v40 }
  0x44   :  { %v135_v45 = vsel %vm99_vm7, %v244_v38, %v131_v41  ;;  %v158_v46 = vadd.f32 1e-07, %v134_v43  ;;  %v132_v48 = vsub.f32 1.0, %v246_v44  ;;  %v138_v50 = vsub.f32 1.0, %v134_v43 }
  0x45   :  { %v159_v47 = vadd.f32 1e-07, %v135_v45  ;;  %247 = vlog2.f32 %v157_v42  ;;  %v139_v54 = vsub.f32 1.0, %v135_v45  ;;  %v141_v58 = vmul.f32 %v137_v49, %v137_v49 }
  0x46   :  { %249 = vlog2.f32 %v158_v46  ;;  %v136_v53 = vsel %vm100_vm8, %v246_v44, %v132_v48  ;;  %v142_v60 = vmul.f32 %v138_v50, %v138_v50 }
  0x47   :  { %251 = vlog2.f32 %v159_v47  ;;  %v160_v56 = vadd.f32 1e-07, %v136_v53  ;;  %v140_v62 = vsub.f32 1.0, %v136_v53  ;;  %v143_v0 = vmul.f32 %v139_v54, %v139_v54 }
  0x48   :  { %v153_v2 = vmul.f32 %v149_v59, %v141_v58  ;;  %v154_v4 = vmul.f32 %v150_v61, %v142_v60 }
  0x49   :  { %253 = vlog2.f32 %v160_v56  ;;  %v144_v5 = vmul.f32 %v140_v62, %v140_v62  ;;  %v155_v12 = vmul.f32 %v151_v63, %v143_v0 }
  0x4b   :  { %v156_v19 = vmul.f32 %v152_v7, %v144_v5 }
  0x4f   :  { %v248_v3 = vpop.eup %247 }
  0x50   :  { %v250_v10 = vpop.eup %249  ;;  %v162_v11 = vmul.f32 0.6931472, %v248_v3 }
  0x51   :  { %v252_v13 = vpop.eup %251  ;;  %v164_v14 = vmul.f32 0.6931472, %v250_v10 }
  0x52   :  { %v169_v16 = vmul.f32 %v162_v11, %v153_v2  ;;  %v166_v17 = vmul.f32 0.6931472, %v252_v13 }
  0x53   :  { %v170_v18 = vmul.f32 %v164_v14, %v154_v4  ;;  %v254_v20 = vpop.eup %253 }
  0x54   :  { %v177_v21 = vsel %vm101_vm2, %v169_v16, 0.0  ;;  %v171_v22 = vmul.f32 %v166_v17, %v155_v12  ;;  %v168_v24 = vmul.f32 0.6931472, %v254_v20 }
  0x55   :  { %v178_v23 = vsel %vm102_vm3, %v170_v18, 0.0  ;;  %v182_v25 = vsel %vm65_vm0, %v177_v21, 0.0 }
  0x56   :  { %v179_v26 = vsel %vm103_vm1, %v171_v22, 0.0  ;;  %v183_v27 = vsel %vm65_vm0, %v178_v23, 0.0  ;;  %v172_v28 = vmul.f32 %v168_v24, %v156_v19 }
  0x57   :  { %v184_v29 = vadd.f32 %v183_v27, %v182_v25  ;;  %v185_v30 = vsel %vm65_vm0, %v179_v26, 0.0 }
  0x58   :  { %v180_v8 = vsel %vm104_vm4, %v172_v28, 0.0 }
  0x59   :  { %v186_v31 = vadd.f32 %v185_v30, %v184_v29  ;;  %v187_v32 = vsel %vm65_vm0, %v180_v8, 0.0 }
  0x5b   :  { %v188_v33 = vadd.f32 %v187_v32, %v186_v31 }
  0x5d   :  { %v201_v34 = vadd.f32 %v200_v9, %v188_v33 }
  0x5f   :  { %202 = vst.msk [vmem:[%s434_s2] sm:$0xff] %vm65_vm0, %v201_v34 }
  0x60   :  { %214 = vsyncpa [#allocation3], 1 }
  0x61   :  { %215 = vsyncpa [#allocation5], 1 }

</bundles_post_ra>
